<compile_context>
chip_gen: v7x
topology: tpu7x:2x2x1
jax: 0.10.0
libtpu: 0.0.40
codegen_flags: <defaults>
</compile_context>

<pallas_src>
import numpy as np
import jax
import jax.numpy as jnp
from jax import lax
from jax.experimental import pallas as pl
from jax.experimental.pallas import tpu as pltpu

WINDOW = 11
SIGMA = 1.5
C1 = 0.01 ** 2
C2 = 0.03 ** 2


def _round_up(x, m):
    return ((x + m - 1) // m) * m


def _gauss_1d():
    g = np.exp(-((np.arange(WINDOW) - WINDOW // 2) ** 2) / (2.0 * SIGMA ** 2))
    return (g / g.sum()).astype(np.float64)


def _band_matrices(H, W, H_pad, Ho_pad, Wo_pad):
    """Banded matrices so the 'valid' separable Gaussian runs on the MXU.

      horizontal:  Th = S  @ gh   with gh (W, Wo_pad)      (lane-padded output)
      vertical:    O  = gv @ Th   with gv (Ho_pad, H_pad)  (zero pad rows/cols)
    """
    g = _gauss_1d()
    Ho, Wo = H - WINDOW + 1, W - WINDOW + 1
    gh = np.zeros((W, Wo_pad), np.float32)
    for wo in range(Wo):
        gh[wo:wo + WINDOW, wo] = g
    gv = np.zeros((Ho_pad, H_pad), np.float32)
    for ho in range(Ho):
        gv[ho, ho:ho + WINDOW] = g
    return jnp.asarray(gh), jnp.asarray(gv)


# ------------------------- generation-gated sizing --------------------------

def _vmem_policy():
    """(working_set_budget, vmem_limit_bytes, min_grid_steps) per TPU gen."""
    try:
        cap = int(pltpu.get_tpu_info().vmem_capacity_bytes)
    except Exception:
        cap = 64 * 1024 * 1024  # unknown -> be conservative (v7x-like)
    if cap >= 100 * 1024 * 1024:
        # v5e / v6e class: 128 MiB VMEM, single TensorCore.
        return 48 * 1024 * 1024, 96 * 1024 * 1024, 2
    # v7x class: 64 MiB VMEM per TensorCore, 2 TCs -> want >= 2 steps per core
    # so double-buffering has a next block to prefetch.
    return 18 * 1024 * 1024, 32 * 1024 * 1024, 4


def _block_bytes(tb, H, W, H_pad, Ho, Wo, Ho_pad, Wo_pad, in_isz, mode, mask_isz):
    """Conservative per-grid-step VMEM working-set estimate (bytes)."""
    A = H_pad * W * 4            # one f32 plane, input-sized (H-padded)
    Bh = H_pad * Wo_pad * 4      # one f32 plane after the horizontal pass
    Cv = Ho_pad * Wo_pad * 4     # one f32 plane after the vertical pass
    per_plane = (
        2 * 2 * H * W * in_isz       # x & y HBM blocks, double-buffered, native dtype
        + 2 * A                      # f32 casts of x, y
        + 3 * A                      # xx, yy, xy
        + 5 * A                      # stacked channel matrix S (concat copy)
        + 5 * Bh                     # Th (horizontal-pass output)
        + 5 * Ho_pad * H_pad * 4     # broadcast gv batch operand
        + 5 * Cv                     # vertical-pass stats (mu_x..e_xy)
        + 8 * Cv                     # SSIM elementwise temporaries
    )
    if mode == "map":
        per_plane += 2 * Cv                          # f32 output block, double-buffered
    elif mode == "masked_reduce":
        per_plane += 2 * Ho * Wo * mask_isz + Cv     # mask block (x2) + f32 cast
    fixed = 2 * (W * Wo_pad + Ho_pad * H_pad) * 4    # gh / gv double buffers
    return tb * per_plane + fixed + (256 << 10)      # + compiler scratch slack


def _choose_tb(nc, budget, min_steps, bytes_fn):
    """Planes per grid step: largest divisor of NC that fits the budget while
    preferring >= min_steps grid steps (pipelining / v7x dual-core)."""
    divs = [d for d in range(1, nc + 1) if nc % d == 0]
    fits = [d for d in divs if bytes_fn(d) <= budget]
    if not fits:
        fits = [1]   # TODO(synk): needs H-strip tiling with halo for huge planes
    pref = [d for d in fits if nc // d >= min_steps]
    return max(pref) if pref else max(fits)


# --------------------------------- kernel -----------------------------------

def _make_kernel(TB, H, W, H_pad, Ho, Wo, Ho_pad, Wo_pad, mode):
    """mode in {'map', 'reduce', 'masked_reduce'}."""

    def kernel(*refs):
        if mode == "masked_reduce":
            x_ref, y_ref, m_ref, gh_ref, gv_ref, o_ref = refs
        else:
            x_ref, y_ref, gh_ref, gv_ref, o_ref = refs

        x = x_ref[...].astype(jnp.float32)          # (TB, H, W)
        y = y_ref[...].astype(jnp.float32)
        if H_pad != H:                              # sublane-align plane slabs
            zpad = jnp.zeros((TB, H_pad - H, W), jnp.float32)
            x = jnp.concatenate([x, zpad], axis=1)
            y = jnp.concatenate([y, zpad], axis=1)

        # 5 SSIM channels built block-wise, stacked channel-major along the
        # (aligned) leading axis -> ONE big horizontal MXU matmul.
        S = jnp.concatenate([x, y, x * x, y * y, x * y], axis=0)   # (5*TB, H_pad, W)
        S2 = S.reshape(5 * TB * H_pad, W)                          # free view
        Th = jnp.dot(S2, gh_ref[...],
                     preferred_element_type=jnp.float32)           # (5*TB*H_pad, Wo_pad)
        Th3 = Th.reshape(5 * TB, H_pad, Wo_pad)                    # free view

        # Vertical pass: ONE batched dot_general over all 5*TB planes.
        gv = gv_ref[...]                                           # (Ho_pad, H_pad)
        gvb = jnp.broadcast_to(gv[None, :, :], (5 * TB, Ho_pad, H_pad))
        O = lax.dot_general(gvb, Th3,
                            dimension_numbers=(((2,), (1,)), ((0,), (0,))),
                            preferred_element_type=jnp.float32)    # (5*TB, Ho_pad, Wo_pad)

        # Channel-major slabs: leading-dim slices at multiples of TB (aligned).
        mu_x = O[0 * TB:1 * TB]
        mu_y = O[1 * TB:2 * TB]
        e_xx = O[2 * TB:3 * TB]
        e_yy = O[3 * TB:4 * TB]
        e_xy = O[4 * TB:5 * TB]

        # SSIM elementwise math ONCE on (TB, Ho_pad, Wo_pad) slabs.
        mu_x2 = mu_x * mu_x
        mu_y2 = mu_y * mu_y
        mu_xy = mu_x * mu_y
        s_x2 = e_xx - mu_x2
        s_y2 = e_yy - mu_y2
        s_xy = e_xy - mu_xy
        num = (2.0 * mu_xy + C1) * (2.0 * s_xy + C2)
        den = (mu_x2 + mu_y2 + C1) * (s_x2 + s_y2 + C2)
        r = pl.reciprocal(den, approx=True)          # EUP vrcp (free slot)
        r = r * (2.0 - den * r)                      # one Newton step ~ f32 exact
        # (den - num)/den == 1 - SSIM, and is *exactly* 0 in padded rows/lanes.
        loss = (den - num) * r                       # (TB, Ho_pad, Wo_pad)

        if mode == "map":
            o_ref[...] = loss.astype(o_ref.dtype)    # lane/sublane-dense store
        else:
            if mode == "masked_reduce":
                m = m_ref[...].astype(jnp.float32)               # (TB, Ho, Wo)
                total = jnp.sum(loss[:, :Ho, :Wo] * m)
            else:
                total = jnp.sum(loss)                # padding contributes exactly 0
            o_ref[...] = jnp.full((1, 8, 128), total, dtype=jnp.float32)

    return kernel


# ------------------------------ pallas wrapper -------------------------------

def _run_ssim(x, y, mask, mode):
    NC, H, W = x.shape
    Ho, Wo = H - WINDOW + 1, W - WINDOW + 1
    H_pad = _round_up(H, 8)
    Ho_pad = _round_up(Ho, 8)
    Wo_pad = _round_up(Wo, 128)

    budget, vmem_limit, min_steps = _vmem_policy()
    in_isz = jnp.dtype(x.dtype).itemsize
    mask_isz = jnp.dtype(mask.dtype).itemsize if mask is not None else 0

    def bytes_fn(tb):
        return _block_bytes(tb, H, W, H_pad, Ho, Wo, Ho_pad, Wo_pad,
                            in_isz, mode, mask_isz)

    TB = _choose_tb(NC, budget, min_steps, bytes_fn)
    G = NC // TB
    gh, gv = _band_matrices(H, W, H_pad, Ho_pad, Wo_pad)

    in_specs = [
        pl.BlockSpec((TB, H, W), lambda i: (i, 0, 0)),
        pl.BlockSpec((TB, H, W), lambda i: (i, 0, 0)),
    ]
    args = [x, y]
    if mode == "masked_reduce":
        in_specs.append(pl.BlockSpec((TB, Ho, Wo), lambda i: (i, 0, 0)))
        args.append(mask)
    # Constant band matrices (index_map is constant -> Pallas skips re-DMA).
    in_specs += [
        pl.BlockSpec((W, Wo_pad), lambda i: (0, 0)),
        pl.BlockSpec((Ho_pad, H_pad), lambda i: (0, 0)),
    ]
    args += [gh, gv]

    if mode == "map":
        out_shape = jax.ShapeDtypeStruct((NC, Ho_pad, Wo_pad), jnp.float32)
        out_specs = pl.BlockSpec((TB, Ho_pad, Wo_pad), lambda i: (i, 0, 0))
    else:
        out_shape = jax.ShapeDtypeStruct((G, 8, 128), jnp.float32)
        out_specs = pl.BlockSpec((1, 8, 128), lambda i: (i, 0, 0))

    return pl.pallas_call(
        _make_kernel(TB, H, W, H_pad, Ho, Wo, Ho_pad, Wo_pad, mode),
        out_shape=out_shape,
        grid_spec=pltpu.PrefetchScalarGridSpec(
            num_scalar_prefetch=0,
            grid=(G,),
            in_specs=in_specs,
            out_specs=out_specs,
        ),
        compiler_params=pltpu.CompilerParams(
            dimension_semantics=("parallel",),
            vmem_limit_bytes=vmem_limit,
        ),
    )(*args)


def ssim_loss_forward(prediction, target, mask=None, reduction='mean'):
    """Mirrors SSIM_Loss.forward (NCHW inputs)."""
    N, C, H, W = prediction.shape
    if H < WINDOW or W < WINDOW:
        raise ValueError(f"spatial dims must be >= {WINDOW}, got {(H, W)}")
    Ho, Wo = H - WINDOW + 1, W - WINDOW + 1
    NC = N * C
    x = prediction.reshape(NC, H, W)   # native dtype; cast to f32 in-kernel
    y = target.reshape(NC, H, W)

    if mask is None:
        if reduction == 'none':
            out = _run_ssim(x, y, None, "map")         # (NC, Ho_pad, Wo_pad)
            return out[:, :Ho, :Wo].reshape(N, C, Ho, Wo)
        partials = _run_ssim(x, y, None, "reduce")
        total = jnp.sum(partials[:, 0, 0])
        if reduction == 'mean':
            return total / jnp.float32(NC * Ho * Wo)
        return total                                   # 'sum'

    # Masked path: reduction fused in-kernel; reproduces the reference module's
    # semantics (global masked sum, divided by the per-batch sum of the
    # ORIGINAL mask when reduction == 'mean' -> result shape (N,)).
    mask_arr = jnp.asarray(mask)
    # Keep the mask narrow on the wire; cast to f32 inside the kernel.
    mask_k = mask_arr if jnp.issubdtype(mask_arr.dtype, jnp.floating) \
        else mask_arr.astype(jnp.bfloat16)
    mask_k = jnp.broadcast_to(mask_k, (N, C, Ho, Wo)).reshape(NC, Ho, Wo)
    partials = _run_ssim(x, y, mask_k, "masked_reduce")
    total = jnp.sum(partials[:, 0, 0])
    if reduction == 'mean':
        norm_factor = jnp.sum(jnp.sum(jnp.sum(mask_arr, axis=-1), axis=-1), axis=-1)
    else:
        norm_factor = jnp.float32(1.0)
    return (1.0 / norm_factor) * total


# ----------------------------- pure-JAX reference ---------------------------

def _ssim_loss_map_ref(pred, targ):
    g = _gauss_1d()
    w2 = jnp.asarray(np.outer(g, g), jnp.float32)[None, None]     # (1,1,11,11)
    N, C, H, W = pred.shape
    Ho, Wo = H - WINDOW + 1, W - WINDOW + 1

    def filt(a):
        a = a.reshape(N * C, 1, H, W).astype(jnp.float32)
        o = lax.conv_general_dilated(
            a, w2, window_strides=(1, 1), padding='VALID',
            dimension_numbers=('NCHW', 'OIHW', 'NCHW'),
            precision=lax.Precision.HIGHEST)
        return o.reshape(N, C, Ho, Wo)

    x = pred.astype(jnp.float32)
    y = targ.astype(jnp.float32)
    mu_x, mu_y = filt(x), filt(y)
    e_xx, e_yy, e_xy = filt(x * x), filt(y * y), filt(x * y)
    mu_x2, mu_y2, mu_xy = mu_x * mu_x, mu_y * mu_y, mu_x * mu_y
    s_x2, s_y2, s_xy = e_xx - mu_x2, e_yy - mu_y2, e_xy - mu_xy
    ssim = ((2 * mu_xy + C1) * (2 * s_xy + C2)) / \
           ((mu_x2 + mu_y2 + C1) * (s_x2 + s_y2 + C2))
    return 1.0 - ssim


if __name__ == "__main__":
    key = jax.random.PRNGKey(0)
    k1, k2, k3 = jax.random.split(key, 3)

    N, C, H, W = 2, 4, 16, 16
    Ho, Wo = H - WINDOW + 1, W - WINDOW + 1
    pred = jax.random.uniform(k1, (N, C, H, W), dtype=jnp.float32)
    targ = jax.random.uniform(k2, (N, C, H, W), dtype=jnp.float32)

    ref_map = _ssim_loss_map_ref(pred, targ)

    # unmasked 'mean' (fully fused reduction in the kernel)
    out_mean = jax.block_until_ready(ssim_loss_forward(pred, targ, reduction='mean'))
    assert out_mean.shape == () and bool(jnp.isfinite(out_mean))
    np.testing.assert_allclose(np.asarray(out_mean), np.asarray(jnp.mean(ref_map)),
                               rtol=2e-2, atol=2e-2)

    # unmasked 'sum' (same fused-reduce kernel)
    out_sum = jax.block_until_ready(ssim_loss_forward(pred, targ, reduction='sum'))
    np.testing.assert_allclose(np.asarray(out_sum), np.asarray(jnp.sum(ref_map)),
                               rtol=2e-2, atol=2e-2)

    # reduction='none' (full loss map, lane/sublane-padded then sliced)
    out_map = jax.block_until_ready(ssim_loss_forward(pred, targ, reduction='none'))
    assert out_map.shape == (N, C, Ho, Wo)
    np.testing.assert_allclose(np.asarray(out_map), np.asarray(ref_map),
                               rtol=2e-2, atol=2e-2)

    # masked 'mean' path (per-batch normalized, shape (N,))
    mask = (jax.random.uniform(k3, (N, C, Ho, Wo)) > 0.5).astype(jnp.float32)
    out_m = jax.block_until_ready(
        ssim_loss_forward(pred, targ, mask=mask, reduction='mean'))
    assert out_m.shape == (N,) and bool(jnp.all(jnp.isfinite(out_m)))
    ref_m = (1.0 / jnp.sum(mask, axis=(-1, -2, -3))) * jnp.sum(ref_map * mask)
    np.testing.assert_allclose(np.asarray(out_m), np.asarray(ref_m),
                               rtol=2e-2, atol=2e-2)

    print("KERNEL_OK")
</pallas_src>

<mosaic_0001>
module attributes {stable_mosaic.version = 11 : i64} {
  func.func @kernel(%arg0: i32, %arg1: memref<2x16x16xf32, #tpu.memory_space<vmem>>, %arg2: memref<2x16x16xf32, #tpu.memory_space<vmem>>, %arg3: memref<16x128xf32, #tpu.memory_space<vmem>>, %arg4: memref<8x16xf32, #tpu.memory_space<vmem>>, %arg5: memref<1x8x128xf32, #tpu.memory_space<vmem>>) attributes {dimension_semantics = [#tpu.dimension_semantics<parallel>], iteration_bounds = array<i64: 4>, scalar_prefetch = 0 : i64, scratch_operands = 0 : i64, tpu.core_type = #tpu.core_type<tc>, window_params = [{transform_indices = @transform_0, window_bounds = array<i64: 2, 16, 16>}, {transform_indices = @transform_1, window_bounds = array<i64: 2, 16, 16>}, {pipeline_mode = #tpu.pipeline_mode<synchronous>, transform_indices = @transform_2, window_bounds = array<i64: 16, 128>}, {pipeline_mode = #tpu.pipeline_mode<synchronous>, transform_indices = @transform_3, window_bounds = array<i64: 8, 16>}, {transform_indices = @transform_4, window_bounds = array<i64: 1, 8, 128>}]} {
    %c0 = arith.constant 0 : index
    %c0_0 = arith.constant 0 : index
    %c0_1 = arith.constant 0 : index
    %0 = vector.load %arg1[%c0, %c0_0, %c0_1] : memref<2x16x16xf32, #tpu.memory_space<vmem>>, vector<2x16x16xf32>
    %c0_2 = arith.constant 0 : index
    %c0_3 = arith.constant 0 : index
    %c0_4 = arith.constant 0 : index
    %1 = vector.load %arg2[%c0_2, %c0_3, %c0_4] : memref<2x16x16xf32, #tpu.memory_space<vmem>>, vector<2x16x16xf32>
    %2 = arith.mulf %0, %0 : vector<2x16x16xf32>
    %3 = arith.mulf %1, %1 : vector<2x16x16xf32>
    %4 = arith.mulf %0, %1 : vector<2x16x16xf32>
    %5 = tpu.concatenate %0, %1, %2, %3, %4 in 0 : vector<2x16x16xf32>, vector<2x16x16xf32>, vector<2x16x16xf32>, vector<2x16x16xf32>, vector<2x16x16xf32> -> vector<10x16x16xf32>
    %6 = vector.shape_cast %5 : vector<10x16x16xf32> to vector<160x16xf32>
    %c0_5 = arith.constant 0 : index
    %c0_6 = arith.constant 0 : index
    %7 = vector.load %arg3[%c0_5, %c0_6] : memref<16x128xf32, #tpu.memory_space<vmem>>, vector<16x128xf32>
    %cst = arith.constant dense<0.000000e+00> : vector<160x128xf32>
    %8 = tpu.matmul %6, %7, %cst {dimension_numbers = #tpu.dot_dimension_numbers<[1], [0], [0], [1], [0, 0, 1, 1], [], []>} : vector<160x16xf32>, vector<16x128xf32>, vector<160x128xf32> -> vector<160x128xf32>
    %9 = vector.shape_cast %8 : vector<160x128xf32> to vector<10x16x128xf32>
    %c0_7 = arith.constant 0 : index
    %c0_8 = arith.constant 0 : index
    %10 = vector.load %arg4[%c0_7, %c0_8] : memref<8x16xf32, #tpu.memory_space<vmem>>, vector<8x16xf32>
    %11 = vector.shape_cast %10 : vector<8x16xf32> to vector<1x8x16xf32>
    %12 = vector.shape_cast %11 : vector<1x8x16xf32> to vector<1x8x16xf32>
    %13 = vector.broadcast %12 : vector<1x8x16xf32> to vector<10x8x16xf32>
    %cst_9 = arith.constant dense<0.000000e+00> : vector<10x8x128xf32>
    %14 = tpu.matmul %13, %9, %cst_9 {dimension_numbers = #tpu.dot_dimension_numbers<[2], [1], [1], [2], [0, 0, 0, 1, 1, 2], [0], [0]>} : vector<10x8x16xf32>, vector<10x16x128xf32>, vector<10x8x128xf32> -> vector<10x8x128xf32>
    %15 = vector.extract_strided_slice %14 {offsets = [0, 0, 0], sizes = [2, 8, 128], strides = [1, 1, 1]} : vector<10x8x128xf32> to vector<2x8x128xf32>
    %16 = vector.extract_strided_slice %14 {offsets = [2, 0, 0], sizes = [2, 8, 128], strides = [1, 1, 1]} : vector<10x8x128xf32> to vector<2x8x128xf32>
    %17 = vector.extract_strided_slice %14 {offsets = [4, 0, 0], sizes = [2, 8, 128], strides = [1, 1, 1]} : vector<10x8x128xf32> to vector<2x8x128xf32>
    %18 = vector.extract_strided_slice %14 {offsets = [6, 0, 0], sizes = [2, 8, 128], strides = [1, 1, 1]} : vector<10x8x128xf32> to vector<2x8x128xf32>
    %19 = vector.extract_strided_slice %14 {offsets = [8, 0, 0], sizes = [2, 8, 128], strides = [1, 1, 1]} : vector<10x8x128xf32> to vector<2x8x128xf32>
    %20 = arith.mulf %15, %15 : vector<2x8x128xf32>
    %21 = arith.mulf %16, %16 : vector<2x8x128xf32>
    %22 = arith.mulf %15, %16 : vector<2x8x128xf32>
    %23 = arith.subf %17, %20 : vector<2x8x128xf32>
    %24 = arith.subf %18, %21 : vector<2x8x128xf32>
    %25 = arith.subf %19, %22 : vector<2x8x128xf32>
    %cst_10 = arith.constant 2.000000e+00 : f32
    %26 = vector.broadcast %cst_10 : f32 to vector<2x8x128xf32>
    %27 = arith.mulf %26, %22 : vector<2x8x128xf32>
    %cst_11 = arith.constant 9.99999974E-5 : f32
    %28 = vector.broadcast %cst_11 : f32 to vector<2x8x128xf32>
    %29 = arith.addf %27, %28 : vector<2x8x128xf32>
    %cst_12 = arith.constant 2.000000e+00 : f32
    %30 = vector.broadcast %cst_12 : f32 to vector<2x8x128xf32>
    %31 = arith.mulf %30, %25 : vector<2x8x128xf32>
    %cst_13 = arith.constant 8.99999984E-4 : f32
    %32 = vector.broadcast %cst_13 : f32 to vector<2x8x128xf32>
    %33 = arith.addf %31, %32 : vector<2x8x128xf32>
    %34 = arith.mulf %29, %33 : vector<2x8x128xf32>
    %35 = arith.addf %20, %21 : vector<2x8x128xf32>
    %cst_14 = arith.constant 9.99999974E-5 : f32
    %36 = vector.broadcast %cst_14 : f32 to vector<2x8x128xf32>
    %37 = arith.addf %35, %36 : vector<2x8x128xf32>
    %38 = arith.addf %23, %24 : vector<2x8x128xf32>
    %cst_15 = arith.constant 8.99999984E-4 : f32
    %39 = vector.broadcast %cst_15 : f32 to vector<2x8x128xf32>
    %40 = arith.addf %38, %39 : vector<2x8x128xf32>
    %41 = arith.mulf %37, %40 : vector<2x8x128xf32>
    %42 = tpu.reciprocal %41 {approx = true} : vector<2x8x128xf32> -> vector<2x8x128xf32>
    %43 = arith.mulf %41, %42 : vector<2x8x128xf32>
    %cst_16 = arith.constant 2.000000e+00 : f32
    %44 = vector.broadcast %cst_16 : f32 to vector<2x8x128xf32>
    %45 = arith.subf %44, %43 : vector<2x8x128xf32>
    %46 = arith.mulf %42, %45 : vector<2x8x128xf32>
    %47 = arith.subf %41, %34 : vector<2x8x128xf32>
    %48 = arith.mulf %47, %46 : vector<2x8x128xf32>
    %49 = vector.shape_cast %48 : vector<2x8x128xf32> to vector<1x2x8x128xf32>
    %cst_17 = arith.constant dense<0.000000e+00> : vector<1xf32>
    %50 = vector.multi_reduction <add>, %49, %cst_17 [1, 2, 3] : vector<1x2x8x128xf32> to vector<1xf32>
    %51 = vector.shape_cast %50 : vector<1xf32> to vector<1x1x1x1xf32>
    %52 = vector.extract %51[0, 0, 0, 0] : f32 from vector<1x1x1x1xf32>
    %53 = vector.broadcast %52 : f32 to vector<1x8x128xf32>
    %c0_18 = arith.constant 0 : index
    %c0_19 = arith.constant 0 : index
    %c0_20 = arith.constant 0 : index
    %54 = vector.load %arg5[%c0_18, %c0_19, %c0_20] : memref<1x8x128xf32, #tpu.memory_space<vmem>>, vector<1x8x128xf32>
    tpu.vector_store %arg5[%c0_18, %c0_19, %c0_20], %53 {strides = array<i32>} : memref<1x8x128xf32, #tpu.memory_space<vmem>>, vector<1x8x128xf32>,
    return
  }
  func.func @transform_0(%arg0: i32) -> (i32, i32, i32) {
    %c0_i32 = arith.constant 0 : i32
    %c0_i32_0 = arith.constant 0 : i32
    %c0_i32_1 = arith.constant 0 : i32
    return %arg0, %c0_i32, %c0_i32_0 : i32, i32, i32
  }
  func.func @transform_1(%arg0: i32) -> (i32, i32, i32) {
    %c0_i32 = arith.constant 0 : i32
    %c0_i32_0 = arith.constant 0 : i32
    %c0_i32_1 = arith.constant 0 : i32
    return %arg0, %c0_i32, %c0_i32_0 : i32, i32, i32
  }
  func.func @transform_2(%arg0: i32) -> (i32, i32) {
    %c0_i32 = arith.constant 0 : i32
    %c0_i32_0 = arith.constant 0 : i32
    %c0_i32_1 = arith.constant 0 : i32
    return %c0_i32, %c0_i32_0 : i32, i32
  }
  func.func @transform_3(%arg0: i32) -> (i32, i32) {
    %c0_i32 = arith.constant 0 : i32
    %c0_i32_0 = arith.constant 0 : i32
    %c0_i32_1 = arith.constant 0 : i32
    return %c0_i32, %c0_i32_0 : i32, i32
  }
  func.func @transform_4(%arg0: i32) -> (i32, i32, i32) {
    %c0_i32 = arith.constant 0 : i32
    %c0_i32_0 = arith.constant 0 : i32
    %c0_i32_1 = arith.constant 0 : i32
    return %arg0, %c0_i32, %c0_i32_0 : i32, i32, i32
  }
}

</mosaic_0001>

<bundles_post_ra>
// kernel: tpu_custom_call.1
= control target key start
LH: loop header
LB: loop body
LE: loop exit
PB: predicated region body
PF: predicated region fallthrough
CT: control target
= control target key end

     0   :  { %s2232_s0 = inlined_call_operand.hbm [shape: f32[8,16,16], index: 0, kind: input, shape index: {}]   ;;  %s2233_s1 = inlined_call_operand.hbm [shape: f32[8,16,16], index: 1, kind: input, shape index: {}]   ;;  %s2234_s2 = inlined_call_operand.hbm [shape: f32[16,128], index: 2, kind: input, shape index: {}]   ;;  %s2235_s3 = inlined_call_operand.vmem [shape: f32[8,16], index: 3, kind: input, shape index: {}]   ;;  %s2236_s4 = inlined_call_operand.hbm [shape: f32[4,8,128], index: 4, kind: output, shape index: {}]  }
   0x1   :  { %2244 = sst [smem:[#allocation14_spill]] %s2232_s0 }
   0x2   :  { %2245 = sst [smem:[#allocation15_spill]] %s2234_s2 }
   0x3   :  { %9 = vsyncpa [#allocation3], 0 }
   0x4   :  { %11 = vsyncpa [#allocation3 + $0x1], 0 }
   0x5   :  { %12 = vsyncpa [#allocation6], 0 }
   0x6   :  { %14 = vsyncpa [#allocation6 + $0x1], 0 }
   0x7   :  { %15 = vsyncpa [#allocation4], 0 }
   0x8   :  { %17 = vsyncpa [#allocation4 + $0x1], 0  ;;  %s1914_s15 = smov 0   ;;  %s1916_s16 = smov 0  }
   0x9   :  { %s1918_s17 = smov 0   ;;  %s1920_s18 = smov 0  }
   0xa LB: > { %s1935_s19 = sadd.s32 4294967295, %s1878_s18   ;;  %s1398_s20 = sadd.s32 4294967294, %s1878_s18   ;;  %s1878_s18 = sphi %s1920_s18, %s2267_s18   ;;  %s1874_s17 = sphi %s1918_s17, %s2266_s17   ;;  %s1870_s16 = sphi %s1916_s16, %s2265_s16   ;;  %s1866_s15 = sphi %s1914_s15, %s2264_s15  }
   0xb   : > { %p43_p0 = scmp.ne.s32.totalorder %s1870_s16, %s1866_s15  ;;  %p2237_p1 = scmp.eq.s32.totalorder %s1935_s19, 0 }
   0xc   : > { %p141_p3 = scmp.eq.s32.totalorder %s1398_s20, 3  ;;  %p1399_p5 = scmp.ge.s32.totalorder %s1878_s18, 1 }
   0xd   : > { %p1944_p4 = por %p2237_p1, %p43_p0  ;;  %p148_p7 = scmp.lt.s32.totalorder %s1878_s18, 5 }
   0xe   : > { %p1949_p6 = por %p141_p3, %p43_p0  ;;  %s1880_s24 = smov [#allocation7]  }
   0xf   : > { %s2246_s21 = scalar_select %p1944_p4, 1, 0 }
  0x10   : > { %s2247_s22 = scalar_select %p1949_p6, 1, 0 }
  0x11   : > { %p1954_p8 = pnand %p1399_p5, %p148_p7  ;;  %s160_s25 = sshll.u32 %s1880_s24, 4  ;;  %s161_s25 = int_to_ptr.vmem [resolvable:$true] %s160_s25 }
  0x12   : > { %s1967_s27 = sadd.s32 1, %s1878_s18   ;;  %s30_s28 = sadd.s32 1, %s1874_s17 }
  0x13   : > { %s2248_s23 = scalar_select %p1954_p8, 1, 0 }
  0x14   : > { %p1655_p9 = pneg %p1954_p8  ;;  %s27_s29 = ssub.s32 %s1878_s18, %s1967_s27 }
  0x15   : > { %s2250_s2 = sld [smem:[#allocation15_spill]] }
  0x16   : > { %p1962_p10 = pnand %p1655_p9, %p2237_p1 }
  0x18   : > { %p1718_p12 = pneg %p1962_p10 }
  0x1b   : > { %s1716_s6 = scalar_lea.hbm %s2250_s2, 256 }
  0x1c   : > { %p1717_p11 = scmp.ne.s32.totalorder %s2250_s2, %s1716_s6  ;;  %p1723_p3 = scmp.lt.u32.totalorder %s1716_s6, %s2250_s2 }
  0x1e   : > { %p1719_p13 = pnand %p1718_p12, %p1717_p11 }
  0x20   : > { %p1720_p0 = pneg %p1719_p13 }
  0x22   : > { %p1725_p5 = pnand %p1723_p3, %p1720_p0 }
  0x24   : > { %1728 = shalt.err (!%p1725_p5)
}
  0x25   : > { %s1729_s11 = scalar_lea.vmem %s161_s25, 256  ;;  %p1737_p2 = scmp.lt.s32.totalorder %s161_s25, %s161_s25 }
  0x26   : > { %p1730_p7 = scmp.ne.s32.totalorder %s161_s25, %s1729_s11  ;;  %p1738_p6 = scmp.lt.s32.totalorder %s1729_s11, %s1729_s11 }
  0x28   : > { %p1732_p9 = pnand %p1730_p7, %p1718_p12  ;;  %p1739_p4 = por %p1738_p6, %p1737_p2 }
  0x2a   : > { %p1733_p1 = pneg %p1732_p9 }
  0x2c   : > { %p1740_p8 = pnand %p1739_p4, %p1733_p1 }
  0x2e   : > { %1743 = shalt.err (!%p1740_p8)
}
  0x2f   : > { %s2240_s12 = smov 128   ;;  %s2242_s13 = smov 8  }
  0x30   : > { %1658 = dma.hbm_to_vmem [thread:$0]  (!%p1962_p10), %s2250_s2, 256, %s161_s25, [#allocation6], %s2240_s12, %s2240_s12, %s2242_s13  }
  0x31   : > { %p28_p1 = scmp.eq.s32.totalorder %s27_s29, 0  ;;  %p37_p2 = scmp.ne.s32.totalorder %s1874_s17, %s1870_s16 }
  0x32   : > { %p38_p4 = scmp.eq.s32.totalorder %s1878_s18, 0  ;;  %p1671_p6 = scmp.lt.s32.totalorder %s1878_s18, 4 }
  0x33   : > { %s1996_s24 = scalar_select %p28_p1, %s1874_s17, %s30_s28  }
  0x34   : > { %p39_p8 = por %p38_p4, %p37_p2  ;;  %p2252_p11 = scmp.eq.s32.totalorder %s1935_s19, 3 }
  0x35   : > { %2251 = sst [smem:[#allocation13_spill]] %s1996_s24  ;;  %s177_s26 = sand.u32 1, %s1874_s17  }
  0x36   : > { %p2000_p12 = por %p2252_p11, %p37_p2  ;;  %s1450_s5 = sshll.u32 %s1878_s18, 9 }
  0x37   : > { %s2006_s6 = sshll.u32 %s177_s26, 5  ;;  %s2254_s0 = sld [smem:[#allocation14_spill]] }
  0x38   : > { %s181_s28 = scalar_lea.vmem [#allocation2], %s2006_s6  ;;  %p2014_p10 = pnand %p1671_p6, %p39_p8 }
  0x39   : > { %s189_s29 = sshll.u32 %s181_s28, 4  ;;  %s2023_s14 = scalar_lea.hbm %s2233_s1, %s1450_s5  ;;  %s2018_s29 = int_to_ptr.vmem [resolvable:$true] %s189_s29 }
  0x3a   : > { %s2025_s20 = scalar_lea.sflag [#allocation3], %s177_s26  ;;  %p1746_p0 = pneg %p2014_p10 }
  0x3d   : > { %s2011_s25 = scalar_lea.hbm %s2254_s0, %s1450_s5  ;;  %s1749_s12 = scalar_lea.hbm %s2254_s0, 2048 }
  0x3e   : > { %s1744_s7 = scalar_lea.hbm %s2011_s25, 512  ;;  %p1750_p7 = scmp.lt.u32.totalorder %s2011_s25, %s2254_s0 }
  0x3f   : > { %p1745_p13 = scmp.ne.s32.totalorder %s2011_s25, %s1744_s7  ;;  %p1751_p9 = scmp.lt.u32.totalorder %s1749_s12, %s1744_s7 }
  0x40   : > { %p1753_p2 = scmp.lt.u32.totalorder %s1744_s7, %s2011_s25 }
  0x41   : > { %p1747_p3 = pnand %p1746_p0, %p1745_p13  ;;  %p1752_p1 = por %p1751_p9, %p1750_p7 }
  0x43   : > { %p1748_p5 = pneg %p1747_p3  ;;  %p1754_p4 = por %p1753_p2, %p1752_p1 }
  0x45   : > { %p1755_p6 = pnand %p1754_p4, %p1748_p5 }
  0x47   : > { %1758 = shalt.err (!%p1755_p6)
}
  0x48   : > { %s1759_s26 = scalar_lea.vmem %s2018_s29, 512  ;;  %s1883_s5 = smov [#allocation2]  }
  0x49   : > { %p1760_p8 = scmp.ne.s32.totalorder %s2018_s29, %s1759_s26  ;;  %s1764_s10 = sshll.u32 %s1883_s5, 4  ;;  %s1765_s10 = int_to_ptr.vmem [resolvable:$false] %s1764_s10 }
  0x4a   : > { %s1766_s2 = scalar_lea.vmem %s1765_s10, 1024  ;;  %p1767_p3 = scmp.lt.s32.totalorder %s2018_s29, %s1765_s10 }
  0x4b   : > { %p1762_p11 = pnand %p1760_p8, %p1746_p0  ;;  %p1768_p7 = scmp.lt.s32.totalorder %s1766_s2, %s1759_s26 }
  0x4d   : > { %p1763_p13 = pneg %p1762_p11  ;;  %p1769_p9 = por %p1768_p7, %p1767_p3 }
  0x4f   : > { %p1770_p1 = pnand %p1769_p9, %p1763_p13 }
  0x51   : > { %1773 = shalt.err (!%p1770_p1)
}
  0x52   : > { %s2256_s12 = smov 8   ;;  %s2257_s13 = smov 128  }
  0x53   : > { %1662 = dma.hbm_to_vmem [thread:$0]  (!%p2014_p10), %s2011_s25, 512, %s2018_s29, %s2025_s20, %s2257_s13, %s2257_s13, %s2256_s12  }
  0x54   : > { %s203_s11 = scalar_lea.vmem [#allocation5], %s2006_s6  ;;  %s199_s8 = sand.u32 1, %s1878_s18  }
  0x55   : > { %s211_s7 = sshll.u32 %s203_s11, 4  ;;  %s2060_s28 = scalar_lea.sflag [#allocation6], %s199_s8  ;;  %s2058_s7 = int_to_ptr.vmem [resolvable:$true] %s211_s7 }
  0x56   : > { %s1774_s26 = scalar_lea.hbm %s2023_s14, 512  ;;  %s1779_s2 = scalar_lea.hbm %s2233_s1, 2048 }
  0x57   : > { %p1775_p5 = scmp.ne.s32.totalorder %s2023_s14, %s1774_s26  ;;  %p1780_p6 = scmp.lt.u32.totalorder %s2023_s14, %s2233_s1 }
  0x58   : > { %p1781_p8 = scmp.lt.u32.totalorder %s1779_s2, %s1774_s26  ;;  %p1783_p13 = scmp.lt.u32.totalorder %s1774_s26, %s2023_s14 }
  0x59   : > { %p1777_p2 = pnand %p1775_p5, %p1746_p0 }
  0x5a   : > { %p1782_p11 = por %p1781_p8, %p1780_p6 }
  0x5b   : > { %p1778_p4 = pneg %p1777_p2 }
  0x5c   : > { %p1784_p3 = por %p1783_p13, %p1782_p11 }
  0x5e   : > { %p1785_p7 = pnand %p1784_p3, %p1778_p4 }
  0x60   : > { %1788 = shalt.err (!%p1785_p7)
}
  0x61   : > { %s1789_s6 = scalar_lea.vmem %s2058_s7, 512  ;;  %s1884_s25 = smov [#allocation5]  }
  0x62   : > { %p1790_p9 = scmp.ne.s32.totalorder %s2058_s7, %s1789_s6  ;;  %s1794_s29 = sshll.u32 %s1884_s25, 4  ;;  %s1795_s29 = int_to_ptr.vmem [resolvable:$false] %s1794_s29 }
  0x63   : > { %s1796_s0 = scalar_lea.vmem %s1795_s29, 1024  ;;  %p1797_p2 = scmp.lt.s32.totalorder %s2058_s7, %s1795_s29 }
  0x64   : > { %p1792_p1 = pnand %p1790_p9, %p1746_p0  ;;  %p1798_p6 = scmp.lt.s32.totalorder %s1796_s0, %s1789_s6 }
  0x66   : > { %p1793_p5 = pneg %p1792_p1  ;;  %p1799_p8 = por %p1798_p6, %p1797_p2 }
  0x68   : > { %p1800_p11 = pnand %p1799_p8, %p1793_p5 }
  0x6a   : > { %1803 = shalt.err (!%p1800_p11)
}
  0x6b   : > { %1665 = dma.hbm_to_vmem [thread:$0]  (!%p2014_p10), %s2023_s14, 512, %s2058_s7, %s2060_s28, %s2257_s13, %s2257_s13, %s2256_s12  }
  0x6c   : > { %p2258_p0 = scmp.ne.s32.totalorder %s2248_s23, 0 }
  0x6d   : > { %s2092_s24 = sand.u32 (!%p2258_p0), 1, %s1870_s16   ;;  %p2259_p4 = scmp.ne.s32.totalorder (!%p2258_p0), %s2246_s21, 0 }
  0x6e   : > { %223 = sbr.rel (%p2258_p0) target bundleno = 837 (0x345), region = 36  ;;  %s1411_s20 = sshll.u32 (!%p2258_p0), %s2092_s24, 5 }
  0x6f   : > { %s226_s11 = scalar_lea.sflag (!%p2258_p0), [#allocation3], %s2092_s24  ;;  %s229_s8 = scalar_lea.vmem (!%p2258_p0), [#allocation2], %s1411_s20 }
  0x75   : > { %1849 = dma.done.wait (%p2259_p4), %s226_s11, 512  }
  0x76   : > { %1851 = vsyncadd (%p2259_p4), %s226_s11, 4294966784  ;;  %s234_s9 = sand.u32 1, %s1935_s19   ;;  %s238_s23 = scalar_lea.vmem [#allocation5], %s1411_s20 }
  0x77   : > { %s235_s14 = scalar_lea.sflag [#allocation6], %s234_s9 }
  0x78   : > { %1853 = dma.done.wait (%p2259_p4), %s235_s14, 512  }
  0x79   : > { %1855 = vsyncadd (%p2259_p4), %s235_s14, 4294966784  ;;  %p2260_p10 = scmp.eq.s32.totalorder %s1935_s19, 0 }
  0x7b   : > { %1857 = dma.done.wait (%p2260_p10), [#allocation6], 256   ;;  %p2261_p13 = pmov %p2260_p10 }
  0x7c   : > { %vm296_vm0 = vcmask 130048   ;;  %v294_v0 = vld [vmem:[#allocation7] sm:$0xff]  ;;  %v295_v1 = vld [vmem:[#allocation7 + $0x8] sm:$0xff]  ;;  %v276_v5 = vld [vmem:[%s229_s8 + $0x10] sm:$0xff]  ;;  %v1885_v23 = vmov 0.0|0.0   ;;  %vm1886_vm1 = vmmov 0  }
  0x7d   : > { %1859 = vsyncadd (%p2261_p13), [#allocation6], 4294967040  ;;  %v274_v2 = vld [vmem:[%s229_s8] sm:$0xff]  ;;  %v1609_v3 = vpack.c.bf16 %v295_v1, %v294_v0  ;;  %v275_v4 = vld [vmem:[%s229_s8 + $0x8] sm:$0xff]  ;;  %v284_v13 = vmul.f32 %v276_v5, %v276_v5  ;;  %1613 = vmatprep.subr.bf16.mxu1 %v1885_v23  ;;  %v1887_v24 = vmov 0.0   ;;  %s1414_s13 = sshll.u32 %s2092_s24, 3 }
  0x7e   : > { %1509 = vmatprep.mubr.msk.f32.mxu0 %vm296_vm0, %v274_v2  ;;  %v277_v6 = vld [vmem:[%s229_s8 + $0x18] sm:$0xff]  ;;  %v278_v7 = vld [vmem:[%s238_s23] sm:$0xff]  ;;  %v279_v8 = vld [vmem:[%s238_s23 + $0x8] sm:$0xff]  ;;  %v282_v10 = vmul.f32 %v274_v2, %v274_v2  ;;  %v283_v12 = vmul.f32 %v275_v4, %v275_v4  ;;  %1543 = vmatprep.mubr.msk.f32.mxu1 %vm1886_vm1, %v1887_v24  ;;  %s271_s7 = scalar_lea.vmem [#allocation8], %s1414_s13  ;;  %s1446_s26 = sshll.u32 %s1935_s19, 7 }
  0x7f   : > { %1610 = vmatprep.subr.bf16.mxu0 %v1609_v3  ;;  %v280_v9 = vld [vmem:[%s238_s23 + $0x10] sm:$0xff]  ;;  %v281_v11 = vld [vmem:[%s238_s23 + $0x18] sm:$0xff]  ;;  %v285_v14 = vmul.f32 %v277_v6, %v277_v6  ;;  %v286_v15 = vmul.f32 %v278_v7, %v278_v7  ;;  %v287_v16 = vmul.f32 %v279_v8, %v279_v8  ;;  %v290_v19 = vmul.f32 %v278_v7, %v274_v2  ;;  %v2135_v29 = vld [vmem:[%s2235_s3] sm:$0xff]  ;;  %s1296_s28 = sshll.u32 %s271_s7, 4  ;;  %s2191_s6 = scalar_lea.hbm %s2236_s4, %s1446_s26  ;;  %s2186_s28 = int_to_ptr.vmem [resolvable:$true] %s1296_s28 }
  0x80   : > { %1612 = vmatpush3.bf16.msra.mxu0 %v1609_v3  ;;  %v288_v17 = vmul.f32 %v280_v9, %v280_v9  ;;  %v289_v18 = vmul.f32 %v281_v11, %v281_v11  ;;  %v291_v20 = vmul.f32 %v279_v8, %v275_v4  ;;  %v292_v21 = vmul.f32 %v280_v9, %v276_v5  ;;  %s1283_s25 = scalar_lea.sflag [#allocation4], %s2092_s24  ;;  %s1804_s29 = scalar_lea.vmem %s2186_s28, 128 }
  0x81   : > { %v293_v22 = vmul.f32 %v281_v11, %v277_v6  ;;  %p1805_p3 = scmp.ne.s32.totalorder %s2186_s28, %s1804_s29  ;;  %s1888_s19 = smov [#allocation8]  }
  0x82   : > { %s1808_s0 = sshll.u32 %s1888_s19, 4  ;;  %s1809_s0 = int_to_ptr.vmem [resolvable:$false] %s1808_s0 }
  0x83   : > { %1510 = vmatmul.mubr.msk.f32.vlgmr.msra.gmra.mrb[0].mxu0 %vm296_vm0, %v275_v4  ;;  %p1806_p7 = pnand %p1805_p3, %p2000_p12  ;;  %s1810_s20 = scalar_lea.vmem %s1809_s0, 256 }
  0x84   : > { %1512 = vmatprep.mubr.msk.f32.mxu0 %vm296_vm0, %v276_v5  ;;  %p1811_p1 = scmp.lt.s32.totalorder %s2186_s28, %s1809_s0  ;;  %p1812_p5 = scmp.lt.s32.totalorder %s1810_s20, %s1804_s29 }
  0x85   : > { %p1807_p9 = pneg %p1806_p7 }
  0x86   : > { %p1813_p2 = por %p1812_p5, %p1811_p1 }
  0x87   : > { %1513 = vmatmul.mubr.msk.f32.gmra.mrb[2].mxu0 %vm296_vm0, %v277_v6 }
  0x88   : > { %1515 = vmatprep.mubr.msk.f32.mxu0 %vm296_vm0, %v278_v7  ;;  %p1814_p6 = pnand %p1813_p2, %p1807_p9 }
  0x8b   : > { %1516 = vmatmul.mubr.msk.f32.gmra.mrb[4].mxu0 %vm296_vm0, %v279_v8 }
  0x8c   : > { %1518 = vmatprep.mubr.msk.f32.mxu0 %vm296_vm0, %v280_v9 }
  0x8f   : > { %1519 = vmatmul.mubr.msk.f32.gmra.mrb[6].mxu0 %vm296_vm0, %v281_v11 }
  0x90   : > { %1521 = vmatprep.mubr.msk.f32.mxu0 %vm296_vm0, %v282_v10 }
  0x93   : > { %1522 = vmatmul.mubr.msk.f32.gmra.mrb[8].mxu0 %vm296_vm0, %v283_v12 }
  0x94   : > { %1524 = vmatprep.mubr.msk.f32.mxu0 %vm296_vm0, %v284_v13 }
  0x97   : > { %1525 = vmatmul.mubr.msk.f32.gmra.mrb[10].mxu0 %vm296_vm0, %v285_v14 }
  0x98   : > { %1527 = vmatprep.mubr.msk.f32.mxu0 %vm296_vm0, %v286_v15 }
  0x9b   : > { %1528 = vmatmul.mubr.msk.f32.gmra.mrb[12].mxu0 %vm296_vm0, %v287_v16 }
  0x9c   : > { %1530 = vmatprep.mubr.msk.f32.mxu0 %vm296_vm0, %v288_v17 }
  0x9f   : > { %1531 = vmatmul.mubr.msk.f32.gmra.mrb[14].mxu0 %vm296_vm0, %v289_v18 }
  0xa0   : > { %1533 = vmatprep.mubr.msk.f32.mxu0 %vm296_vm0, %v290_v19 }
  0xa3   : > { %1534 = vmatmul.mubr.msk.f32.gmra.mrb[16].mxu0 %vm296_vm0, %v291_v20 }
  0xa4   : > { %1536 = vmatprep.mubr.msk.f32.mxu0 %vm296_vm0, %v292_v21 }
  0xa7   : > { %1537 = vmatmul.mubr.msk.f32.gmra.mrb[18].mxu0 %vm296_vm0, %v293_v22 }
 0x156   : > { %v1511_v25 = vpop.f32.mrb[0].mxu0 }
 0x157   : > { %v423_v26 = vpop.f32.mrb[1].mxu0 }
 0x158   : > { %v1614_v27 = vpack.c.bf16 %v1511_v25, %v423_v26 }
 0x15a   : > { %v1514_v28 = vpop.f32.mrb[2].mxu0  ;;  %1615 = vmatpush3.bf16.msra.mxu1 %v1614_v27 }
 0x15b   : > { %v433_v30 = vpop.f32.mrb[3].mxu0  ;;  %1616 = vmatprep.subr.bf16.mxu1 %v1885_v23 }
 0x15c   : > { %v1617_v31 = vpack.c.bf16 %v1514_v28, %v433_v30 }
 0x15d   : > { %1544 = vmatmul.mubr.msk.f32.vlgmr.msra.gmra.mrb[0].mxu1 %vm296_vm0, %v2135_v29 }
 0x15e   : > { %v1517_v32 = vpop.f32.mrb[4].mxu0  ;;  %1618 = vmatpush3.bf16.msra.mxu1 %v1617_v31  ;;  %1550 = vmatprep.mubr.msk.f32.mxu1 %vm1886_vm1, %v1887_v24 }
 0x15f   : > { %v443_v33 = vpop.f32.mrb[5].mxu0  ;;  %1619 = vmatprep.subr.bf16.mxu1 %v1885_v23 }
 0x160   : > { %v1620_v34 = vpack.c.bf16 %v1517_v32, %v443_v33 }
 0x161   : > { %1551 = vmatmul.mubr.msk.f32.vlgmr.msra.gmra.mrb[2].mxu1 %vm296_vm0, %v2135_v29 }
 0x162   : > { %v1520_v35 = vpop.f32.mrb[6].mxu0  ;;  %1621 = vmatpush3.bf16.msra.mxu1 %v1620_v34  ;;  %1557 = vmatprep.mubr.msk.f32.mxu1 %vm1886_vm1, %v1887_v24 }
 0x163   : > { %v453_v36 = vpop.f32.mrb[7].mxu0  ;;  %1622 = vmatprep.subr.bf16.mxu1 %v1885_v23 }
 0x164   : > { %v1623_v37 = vpack.c.bf16 %v1520_v35, %v453_v36 }
 0x165   : > { %1558 = vmatmul.mubr.msk.f32.vlgmr.msra.gmra.mrb[4].mxu1 %vm296_vm0, %v2135_v29 }
 0x166   : > { %v1523_v38 = vpop.f32.mrb[8].mxu0  ;;  %1624 = vmatpush3.bf16.msra.mxu1 %v1623_v37  ;;  %1564 = vmatprep.mubr.msk.f32.mxu1 %vm1886_vm1, %v1887_v24 }
 0x167   : > { %v463_v39 = vpop.f32.mrb[9].mxu0  ;;  %1625 = vmatprep.subr.bf16.mxu1 %v1885_v23 }
 0x168   : > { %v1626_v40 = vpack.c.bf16 %v1523_v38, %v463_v39 }
 0x169   : > { %1565 = vmatmul.mubr.msk.f32.vlgmr.msra.gmra.mrb[6].mxu1 %vm296_vm0, %v2135_v29 }
 0x16a   : > { %v1526_v41 = vpop.f32.mrb[10].mxu0  ;;  %1627 = vmatpush3.bf16.msra.mxu1 %v1626_v40  ;;  %1571 = vmatprep.mubr.msk.f32.mxu1 %vm1886_vm1, %v1887_v24 }
 0x16b   : > { %v473_v42 = vpop.f32.mrb[11].mxu0  ;;  %1628 = vmatprep.subr.bf16.mxu1 %v1885_v23 }
 0x16c   : > { %v1629_v43 = vpack.c.bf16 %v1526_v41, %v473_v42 }
 0x16d   : > { %1572 = vmatmul.mubr.msk.f32.vlgmr.msra.gmra.mrb[8].mxu1 %vm296_vm0, %v2135_v29 }
 0x16e   : > { %v1529_v44 = vpop.f32.mrb[12].mxu0  ;;  %1630 = vmatpush3.bf16.msra.mxu1 %v1629_v43  ;;  %1578 = vmatprep.mubr.msk.f32.mxu1 %vm1886_vm1, %v1887_v24 }
 0x16f   : > { %v483_v45 = vpop.f32.mrb[13].mxu0  ;;  %1631 = vmatprep.subr.bf16.mxu1 %v1885_v23 }
 0x170   : > { %v1632_v46 = vpack.c.bf16 %v1529_v44, %v483_v45 }
 0x171   : > { %1579 = vmatmul.mubr.msk.f32.vlgmr.msra.gmra.mrb[10].mxu1 %vm296_vm0, %v2135_v29 }
 0x172   : > { %v1532_v47 = vpop.f32.mrb[14].mxu0  ;;  %1633 = vmatpush3.bf16.msra.mxu1 %v1632_v46  ;;  %1585 = vmatprep.mubr.msk.f32.mxu1 %vm1886_vm1, %v1887_v24 }
 0x173   : > { %v493_v48 = vpop.f32.mrb[15].mxu0  ;;  %1634 = vmatprep.subr.bf16.mxu1 %v1885_v23 }
 0x174   : > { %v1635_v49 = vpack.c.bf16 %v1532_v47, %v493_v48 }
 0x175   : > { %1586 = vmatmul.mubr.msk.f32.vlgmr.msra.gmra.mrb[12].mxu1 %vm296_vm0, %v2135_v29 }
 0x176   : > { %v1535_v50 = vpop.f32.mrb[16].mxu0  ;;  %1636 = vmatpush3.bf16.msra.mxu1 %v1635_v49  ;;  %1592 = vmatprep.mubr.msk.f32.mxu1 %vm1886_vm1, %v1887_v24 }
 0x177   : > { %v503_v51 = vpop.f32.mrb[17].mxu0  ;;  %1637 = vmatprep.subr.bf16.mxu1 %v1885_v23 }
 0x178   : > { %v1638_v52 = vpack.c.bf16 %v1535_v50, %v503_v51 }
 0x179   : > { %1593 = vmatmul.mubr.msk.f32.vlgmr.msra.gmra.mrb[14].mxu1 %vm296_vm0, %v2135_v29 }
 0x17a   : > { %v1538_v53 = vpop.f32.mrb[18].mxu0  ;;  %1639 = vmatpush3.bf16.msra.mxu1 %v1638_v52  ;;  %1599 = vmatprep.mubr.msk.f32.mxu1 %vm1886_vm1, %v1887_v24 }
 0x17b   : > { %v513_v54 = vpop.f32.mrb[19].mxu0  ;;  %1640 = vmatprep.subr.bf16.mxu1 %v1885_v23 }
 0x17c   : > { %v1641_v55 = vpack.c.bf16 %v1538_v53, %v513_v54 }
 0x17d   : > { %1600 = vmatmul.mubr.msk.f32.vlgmr.msra.gmra.mrb[16].mxu1 %vm296_vm0, %v2135_v29 }
 0x17e   : > { %1642 = vmatpush3.bf16.msra.mxu1 %v1641_v55  ;;  %1606 = vmatprep.mubr.msk.f32.mxu1 %vm1886_vm1, %v1887_v24 }
 0x181   : > { %1607 = vmatmul.mubr.msk.f32.vlgmr.msra.gmra.mrb[18].mxu1 %vm296_vm0, %v2135_v29 }
 0x230   : > { %v592_v56 = vpop.f32.mrb[0].mxu1 }
 0x231   : > { %v1545_v57 = vpop.f32.mrb[1].mxu1  ;;  %v1226_v61 = vmul.f32 %v592_v56, %v592_v56 }
 0x234   : > { %v662_v58 = vpop.f32.mrb[2].mxu1 }
 0x235   : > { %v1552_v59 = vpop.f32.mrb[3].mxu1  ;;  %v1227_v3 = vmul.f32 %v662_v58, %v662_v58 }
 0x238   : > { %v732_v60 = vpop.f32.mrb[4].mxu1 }
 0x239   : > { %v1228_v62 = vmul.f32 %v732_v60, %v732_v60  ;;  %v1230_v63 = vmul.f32 %v732_v60, %v592_v56  ;;  %v1559_v0 = vpop.f32.mrb[5].mxu1 }
 0x23b   : > { %v1248_v1 = vadd.f32 %v1228_v62, %v1226_v61  ;;  %v1238_v25 = vmul.f32 2.0, %v1230_v63 }
 0x23c   : > { %v802_v2 = vpop.f32.mrb[6].mxu1 }
 0x23d   : > { %v1229_v4 = vmul.f32 %v802_v2, %v802_v2  ;;  %v1231_v5 = vmul.f32 %v802_v2, %v662_v58  ;;  %v1566_v6 = vpop.f32.mrb[7].mxu1  ;;  %v1250_v19 = vadd.f32 0.0001, %v1248_v1  ;;  %v1240_v33 = vadd.f32 0.0001, %v1238_v25 }
 0x23f   : > { %v1249_v7 = vadd.f32 %v1229_v4, %v1227_v3  ;;  %v1239_v35 = vmul.f32 2.0, %v1231_v5 }
 0x240   : > { %v872_v8 = vpop.f32.mrb[8].mxu1 }
 0x241   : > { %v1232_v9 = vsub.f32 %v872_v8, %v1226_v61  ;;  %v1573_v10 = vpop.f32.mrb[9].mxu1  ;;  %v1251_v27 = vadd.f32 0.0001, %v1249_v7  ;;  %v1241_v41 = vadd.f32 0.0001, %v1239_v35 }
 0x244   : > { %v942_v11 = vpop.f32.mrb[10].mxu1 }
 0x245   : > { %v1233_v12 = vsub.f32 %v942_v11, %v1227_v3  ;;  %v1580_v13 = vpop.f32.mrb[11].mxu1 }
 0x248   : > { %v1012_v14 = vpop.f32.mrb[12].mxu1 }
 0x249   : > { %v1234_v15 = vsub.f32 %v1012_v14, %v1228_v62  ;;  %v1587_v16 = vpop.f32.mrb[13].mxu1 }
 0x24b   : > { %v1252_v17 = vadd.f32 %v1234_v15, %v1232_v9 }
 0x24c   : > { %v1082_v18 = vpop.f32.mrb[14].mxu1 }
 0x24d   : > { %v1254_v20 = vadd.f32 0.0009, %v1252_v17  ;;  %v1235_v21 = vsub.f32 %v1082_v18, %v1229_v4  ;;  %v1594_v22 = vpop.f32.mrb[15].mxu1 }
 0x24f   : > { %v1256_v23 = vmul.f32 %v1254_v20, %v1250_v19  ;;  %v1253_v24 = vadd.f32 %v1235_v21, %v1233_v12 }
 0x250   : > { %v1152_v26 = vpop.f32.mrb[16].mxu1 }
 0x251   : > { %1712 = vrcp.f32 %v1256_v23  ;;  %v1255_v28 = vadd.f32 0.0009, %v1253_v24  ;;  %v1236_v29 = vsub.f32 %v1152_v26, %v1230_v63  ;;  %v1601_v30 = vpop.f32.mrb[17].mxu1 }
 0x253   : > { %v1257_v31 = vmul.f32 %v1255_v28, %v1251_v27  ;;  %v1242_v32 = vmul.f32 2.0, %v1236_v29 }
 0x254   : > { %v1222_v34 = vpop.f32.mrb[18].mxu1 }
 0x255   : > { %1714 = vrcp.f32 %v1257_v31  ;;  %v1244_v36 = vadd.f32 0.0009, %v1242_v32  ;;  %v1237_v37 = vsub.f32 %v1222_v34, %v1231_v5  ;;  %v1608_v38 = vpop.f32.mrb[19].mxu1 }
 0x257   : > { %v1246_v39 = vmul.f32 %v1244_v36, %v1240_v33  ;;  %v1243_v40 = vmul.f32 2.0, %v1237_v37 }
 0x259   : > { %v1245_v42 = vadd.f32 0.0009, %v1243_v40  ;;  %v1266_v43 = vsub.f32 %v1256_v23, %v1246_v39 }
 0x25b   : > { %v1713_v44 = vpop.eup %1712  ;;  %v1247_v45 = vmul.f32 %v1245_v42, %v1241_v41 }
 0x25c   : > { %v1260_v46 = vmul.f32 %v1713_v44, %v1256_v23 }
 0x25d   : > { %v1267_v47 = vsub.f32 %v1257_v31, %v1247_v45 }
 0x25e   : > { %v1262_v48 = vsub.f32 2.0, %v1260_v46 }
 0x25f   : > { %v1715_v49 = vpop.eup %1714 }
 0x260   : > { %v1261_v50 = vmul.f32 %v1715_v49, %v1257_v31  ;;  %v1264_v51 = vmul.f32 %v1713_v44, %v1262_v48 }
 0x262   : > { %v1263_v52 = vsub.f32 2.0, %v1261_v50  ;;  %v1268_v53 = vmul.f32 %v1266_v43, %v1264_v51 }
 0x264   : > { %v1265_v54 = vmul.f32 %v1715_v49, %v1263_v52 }
 0x266   : > { %v1269_v55 = vmul.f32 %v1267_v47, %v1265_v54 }
 0x268   : > { %v1270_v56 = vadd.f32 %v1269_v55, %v1268_v53 }
 0x26a   : > { %1271 = vadd.xlane.f32.xlu0 %v1270_v56 }
 0x2f7   : > { %v1272_v57 = vpop.xlane.xlu0 %1271 }
 0x2f8   : > { %v1273_v58 = vrot.slane %v1272_v57, 4 }
 0x2fa   : > { %v1274_v59 = vadd.f32 %v1273_v58, %v1272_v57 }
 0x2fc   : > { %v1275_v60 = vrot.slane %v1274_v59, 2 }
 0x2fe   : > { %v1276_v61 = vadd.f32 %v1275_v60, %v1274_v59 }
 0x300   : > { %v1277_v62 = vrot.slane %v1276_v61, 1 }
 0x302   : > { %v1278_v63 = vadd.f32 %v1277_v62, %v1276_v61 }
 0x304   : > { %1643 = vpush %v1278_v63 }
 0x335   : > { %s1644_s5 = spop %1643 }
 0x336   : > { %v1280_v0 = vstv %s1644_s5 }
 0x337   : > { %1281 = vst [vmem:[%s271_s7] sm:$0xff] %v1280_v0 }
 0x338   : > { %1817 = shalt.err (!%p1814_p6)
}
 0x339   : > { %s1818_s24 = scalar_lea.hbm %s2191_s6, 128  ;;  %s1822_s9 = scalar_lea.hbm %s2236_s4, 512 }
 0x33a   : > { %p1819_p8 = scmp.ne.s32.totalorder %s2191_s6, %s1818_s24  ;;  %p1823_p4 = scmp.lt.u32.totalorder %s2191_s6, %s2236_s4 }
 0x33b   : > { %p1824_p10 = scmp.lt.u32.totalorder %s1822_s9, %s1818_s24  ;;  %p1826_p3 = scmp.lt.u32.totalorder %s1818_s24, %s2191_s6 }
 0x33c   : > { %p1820_p11 = pnand %p1819_p8, %p2000_p12 }
 0x33d   : > { %p1825_p13 = por %p1824_p10, %p1823_p4 }
 0x33e   : > { %p1821_p0 = pneg %p1820_p11 }
 0x33f   : > { %p1827_p7 = por %p1826_p3, %p1825_p13 }
 0x341   : > { %p1828_p9 = pnand %p1827_p7, %p1821_p0 }
 0x343   : > { %1831 = shalt.err (!%p1828_p9)
}
 0x344   : > { %1653 = dma.vmem_to_hbm [thread:$0]  (%p2000_p12), %s2186_s28, 128, %s2191_s6, %s1283_s25  }
 0x345 PF: > { %p1673_p1 = scmp.ge.s32.totalorder %s1878_s18, 2  ;;  %s1308_s21 = sand.u32 1, %s1866_s15  }
 0x346   : > { %p2262_p5 = scmp.ne.s32.totalorder %s2247_s22, 0  ;;  %s1309_s12 = scalar_lea.sflag [#allocation4], %s1308_s21 }
 0x348   : > { %p1667_p2 = pnand %p1673_p1, %p2262_p5 }
 0x34a   : > { %1861 = dma.done.wait (!%p1667_p2), %s1309_s12, 128  }
 0x34b   : > { %1863 = vsyncadd (!%p1667_p2), %s1309_s12, 4294967168  ;;  %s2263_s13 = sld [smem:[#allocation13_spill]]  ;;  %p20_p6 = scmp.ge.s32.totalorder %s1967_s27, 6  }
 0x34c   : > { %s2264_s15 = smov %s1870_s16  ;;  %s2265_s16 = smov %s1874_s17 }
 0x34d   : > { %s2267_s18 = smov %s1967_s27  ;;  %22 = sbr.rel (!%p20_p6) target bundleno = 10 (0xa), region = 98 }
 0x351   : > { %s2266_s17 = smov %s2263_s13 }
 0x354   :  { %1314 = vsyncpa [#allocation3], 1 }
 0x355   :  { %1316 = vsyncpa [#allocation3 + $0x1], 1 }
 0x356   :  { %1317 = vsyncpa [#allocation6], 1 }
 0x357   :  { %1319 = vsyncpa [#allocation6 + $0x1], 1 }
 0x358   :  { %1320 = vsyncpa [#allocation4], 1 }
 0x359   :  { %1322 = vsyncpa [#allocation4 + $0x1], 1 }

</bundles_post_ra>
